<compile_context>
chip_gen: v7x
topology: tpu7x:2x2x1
jax: 0.10.0
libtpu: 0.0.40
codegen_flags: <defaults>
</compile_context>

<pallas_src>
import functools

import jax
import jax.numpy as jnp
from jax.experimental import pallas as pl
from jax.experimental.pallas import tpu as pltpu


# ----------------------------------------------------------------------------
# Pallas kernel: whole VAE forward (encoder + reparam + decoder) on one batch tile
# ----------------------------------------------------------------------------
def cvae_kernel(
    # data (batch-tiled)
    xc_ref, spk_ref, eps_ref,
    # fused encoder-head / condition weights
    encin_w_ref, encin_b_ref,
    # encoder residual layers
    elw_ref, elb_ref,
    # fused mean|logvar projection
    emlv_w_ref, emlv_b_ref,
    # decoder params
    emb_ref, dw1_ref, db1_ref, dlw_ref, dlb_ref, dw2_ref, db2_ref,
    lng_ref, lnb_ref,
    # outputs
    out_ref, mlv_ref,
):
    f32 = jnp.float32
    bf16 = jnp.bfloat16

    L, H = dw1_ref.shape          # (latent, hidden)

    def mm(a, w):
        # bf16 MXU inputs, f32 accumulation.
        return jnp.dot(a.astype(bf16), w, preferred_element_type=f32)

    xc = xc_ref[...].astype(f32)  # (TB, input+cond)

    # ---------------- Encoder fc1 fused with decoder condition_layer ---------
    # encin_w is block-diagonal [[enc_w1, 0], [0, cond_w]]  -> one MXU push.
    head = mm(xc, encin_w_ref[...]) + encin_b_ref[...]      # (TB, 2H) f32
    h = jnp.maximum(head[:, :H], 0.0)                       # relu(x @ enc_w1 + b1)
    cond_act = jnp.maximum(head[:, H:], 0.0)                # relu(cond @ cond_w + cb)

    # ---------------- Encoder residual layers ----------------
    for i in range(elw_ref.shape[0]):
        h = h + jnp.maximum(mm(h, elw_ref[i]) + elb_ref[i], 0.0)

    # ---------------- Fused mean | logvar projection ----------------
    mlv = mm(h, emlv_w_ref[...]) + emlv_b_ref[...]          # (TB, 2*latent)
    mlv_ref[...] = mlv                                      # single lane-dense store
    mean = mlv[:, :L]
    logvar = mlv[:, L:]

    # ---------------- Reparameterize (f32 elementwise) ----------------
    z = mean + eps_ref[...].astype(f32) * jnp.exp(0.5 * logvar)

    # ---------------- Decoder ----------------
    hd = jnp.maximum(mm(z, dw1_ref[...]) + db1_ref[...], 0.0)
    hd = hd + cond_act                                      # condition branch (eval mode)

    # speaker embedding lookup as one-hot @ table (exact, MXU-friendly for tiny
    # tables). TODO(synk): for large speaker tables switch to a scalar-prefetched
    # row gather (PrefetchScalarGridSpec + pl.Element / manual DMA) instead.
    n_emb = emb_ref.shape[0]
    spk = spk_ref[...]                                      # (TB, 1) int32
    onehot = (
        jax.lax.broadcasted_iota(jnp.int32, (spk.shape[0], n_emb), 1) == spk
    ).astype(f32)
    hd = hd + jnp.dot(onehot, emb_ref[...], preferred_element_type=f32)

    def layer_norm(v, i):
        mu = jnp.mean(v, axis=-1, keepdims=True)
        var = jnp.mean((v - mu) * (v - mu), axis=-1, keepdims=True)
        return (v - mu) * jax.lax.rsqrt(var + 1e-5) * lng_ref[i] + lnb_ref[i]

    n_dec = dlw_ref.shape[0]
    for i in range(n_dec):
        pre = mm(hd, dlw_ref[i]) + dlb_ref[i]
        hd = hd + jnp.maximum(layer_norm(pre, i), 0.0)

    out_ref[...] = mm(layer_norm(hd, n_dec), dw2_ref[...]) + db2_ref[...]


# ----------------------------------------------------------------------------
# Wrapper
# ----------------------------------------------------------------------------
@functools.partial(jax.jit, static_argnames=("batch_block",))
def conditional_vae_forward(x, condition, speaker, eps, params, *, batch_block=8):
    f32 = jnp.float32
    bf16 = jnp.bfloat16

    batch, input_size = x.shape
    cond_size = condition.shape[1]
    latent_size = eps.shape[1]
    hidden_size = params["enc_w1"].shape[1]
    n_enc = params["enc_lw"].shape[0]
    n_dec = params["dec_lw"].shape[0]
    n_emb = params["emb"].shape[0]

    TB = min(batch_block, batch)
    assert batch % TB == 0, "demo wrapper assumes batch divisible by batch tile"
    grid = (pl.cdiv(batch, TB),)

    # ----- wrapper-side weight fusion (constant-folded under jit) -----
    # encoder fc1 + decoder condition_layer -> block-diagonal (in+cond, 2H)
    encin_w = jnp.zeros((input_size + cond_size, 2 * hidden_size), f32)
    encin_w = encin_w.at[:input_size, :hidden_size].set(params["enc_w1"])
    encin_w = encin_w.at[input_size:, hidden_size:].set(params["cond_w"])
    encin_b = jnp.concatenate([params["enc_b1"], params["cond_b"]], axis=1)
    # mean | logvar fused projection
    emlv_w = jnp.concatenate([params["enc_wm"], params["enc_wv"]], axis=1)
    emlv_b = jnp.concatenate([params["enc_bm"], params["enc_bv"]], axis=1)

    xc = jnp.concatenate([x, condition], axis=1).astype(f32)

    inputs = (
        xc, speaker, eps,
        encin_w.astype(bf16), encin_b,
        params["enc_lw"].astype(bf16), params["enc_lb"],
        emlv_w.astype(bf16), emlv_b,
        params["emb"],
        params["dec_w1"].astype(bf16), params["dec_b1"],
        params["dec_lw"].astype(bf16), params["dec_lb"],
        params["dec_w2"].astype(bf16), params["dec_b2"],
        params["ln_g"], params["ln_b"],
    )

    def row_spec(cols):
        # batch-tiled activation / output spec
        return pl.BlockSpec((TB, cols), lambda b: (b, 0))

    def full_spec(shape):
        # whole-array, VMEM-resident across the batch grid axis
        zeros = (0,) * len(shape)
        return pl.BlockSpec(shape, lambda b: zeros)

    in_specs = [
        row_spec(input_size + cond_size),      # xc
        row_spec(1),                           # speaker
        row_spec(latent_size),                 # eps
        full_spec((input_size + cond_size, 2 * hidden_size)),  # encin_w
        full_spec((1, 2 * hidden_size)),       # encin_b
        full_spec((n_enc, hidden_size, hidden_size)),          # enc_lw
        full_spec((n_enc, 1, hidden_size)),    # enc_lb
        full_spec((hidden_size, 2 * latent_size)),             # emlv_w
        full_spec((1, 2 * latent_size)),       # emlv_b
        full_spec((n_emb, hidden_size)),       # emb
        full_spec((latent_size, hidden_size)),  # dec_w1
        full_spec((1, hidden_size)),           # dec_b1
        full_spec((n_dec, hidden_size, hidden_size)),          # dec_lw
        full_spec((n_dec, 1, hidden_size)),    # dec_lb
        full_spec((hidden_size, input_size)),  # dec_w2
        full_spec((1, input_size)),            # dec_b2
        full_spec((n_dec + 1, 1, hidden_size)),  # ln_g
        full_spec((n_dec + 1, 1, hidden_size)),  # ln_b
    ]

    out_shape = (
        jax.ShapeDtypeStruct((batch, input_size), f32),       # output
        jax.ShapeDtypeStruct((batch, 2 * latent_size), f32),  # [mean | logvar]
    )
    out_specs = (row_spec(input_size), row_spec(2 * latent_size))

    # advisory cost estimate for XLA's scheduler
    flops = 2 * batch * (
        (input_size + cond_size) * 2 * hidden_size
        + n_enc * hidden_size * hidden_size
        + hidden_size * 2 * latent_size
        + latent_size * hidden_size
        + n_emb * hidden_size
        + n_dec * hidden_size * hidden_size
        + hidden_size * input_size
    )
    transcendentals = batch * (latent_size + n_dec + 1)
    bytes_accessed = int(
        sum(a.size * jnp.dtype(a.dtype).itemsize for a in inputs)
        + batch * (input_size + 2 * latent_size) * 4
    )

    out, mlv = pl.pallas_call(
        cvae_kernel,
        out_shape=out_shape,
        grid=grid,
        in_specs=in_specs,
        out_specs=out_specs,
        compiler_params=pltpu.CompilerParams(
            dimension_semantics=("parallel",),
            vmem_limit_bytes=32 * 1024 * 1024,
        ),
        cost_estimate=pl.CostEstimate(
            flops=flops,
            transcendentals=transcendentals,
            bytes_accessed=bytes_accessed,
        ),
    )(*inputs)

    mean = mlv[:, :latent_size]
    logvar = mlv[:, latent_size:]
    return out, mean, logvar


# ----------------------------------------------------------------------------
# Pure-JAX reference (mirrors the PyTorch forward in eval mode, with the same
# bf16-input / f32-accumulation matmul policy as the kernel) for validation.
# ----------------------------------------------------------------------------
def reference_forward(x, condition, speaker, eps, p):
    f32 = jnp.float32
    bf16 = jnp.bfloat16
    mm = lambda a, w: jnp.dot(a.astype(bf16), w.astype(bf16),
                              preferred_element_type=f32)
    relu = lambda v: jnp.maximum(v, 0.0)

    h = relu(mm(x, p["enc_w1"]) + p["enc_b1"])
    for i in range(p["enc_lw"].shape[0]):
        h = h + relu(mm(h, p["enc_lw"][i]) + p["enc_lb"][i])
    mean = mm(h, p["enc_wm"]) + p["enc_bm"]
    logvar = mm(h, p["enc_wv"]) + p["enc_bv"]
    z = mean + eps * jnp.exp(0.5 * logvar)

    hd = relu(mm(z, p["dec_w1"]) + p["dec_b1"])
    hd = hd + relu(mm(condition, p["cond_w"]) + p["cond_b"])
    hd = hd + p["emb"][speaker[:, 0]]

    def ln(v, i):
        mu = jnp.mean(v, axis=-1, keepdims=True)
        var = jnp.mean((v - mu) ** 2, axis=-1, keepdims=True)
        return (v - mu) * jax.lax.rsqrt(var + 1e-5) * p["ln_g"][i] + p["ln_b"][i]

    for i in range(p["dec_lw"].shape[0]):
        hd = hd + relu(ln(mm(hd, p["dec_lw"][i]) + p["dec_lb"][i], i))
    out = mm(ln(hd, p["dec_lw"].shape[0]), p["dec_w2"]) + p["dec_b2"]
    return out, mean, logvar


# ----------------------------------------------------------------------------
# Deterministic parameter init (PyTorch layout pre-transposed to [in, out])
# ----------------------------------------------------------------------------
def init_params(key, input_size, hidden_size, latent_size, num_speakers,
                condition_size, num_enc_layers=3, num_dec_layers=3):
    ks = iter(jax.random.split(key, 32))
    nrm = lambda k, shp, s=0.1: (s * jax.random.normal(k, shp)).astype(jnp.float32)
    return {
        # encoder
        "enc_w1": nrm(next(ks), (input_size, hidden_size)),
        "enc_b1": nrm(next(ks), (1, hidden_size)),
        "enc_lw": nrm(next(ks), (num_enc_layers, hidden_size, hidden_size)),
        "enc_lb": nrm(next(ks), (num_enc_layers, 1, hidden_size)),
        "enc_wm": nrm(next(ks), (hidden_size, latent_size)),
        "enc_bm": nrm(next(ks), (1, latent_size)),
        "enc_wv": nrm(next(ks), (hidden_size, latent_size)),
        "enc_bv": nrm(next(ks), (1, latent_size)),
        # decoder
        "cond_w": nrm(next(ks), (condition_size, hidden_size)),
        "cond_b": nrm(next(ks), (1, hidden_size)),
        "emb":    nrm(next(ks), (num_speakers + 1, hidden_size)),
        "dec_w1": nrm(next(ks), (latent_size, hidden_size)),
        "dec_b1": nrm(next(ks), (1, hidden_size)),
        "dec_lw": nrm(next(ks), (num_dec_layers, hidden_size, hidden_size)),
        "dec_lb": nrm(next(ks), (num_dec_layers, 1, hidden_size)),
        "dec_w2": nrm(next(ks), (hidden_size, input_size)),
        "dec_b2": nrm(next(ks), (1, input_size)),
        # layer norms: PyTorch default init (gamma=1, beta=0)
        "ln_g": jnp.ones((num_dec_layers + 1, 1, hidden_size), jnp.float32),
        "ln_b": jnp.zeros((num_dec_layers + 1, 1, hidden_size), jnp.float32),
    }


if __name__ == "__main__":
    batch = 16          # 2 batch tiles of 8 -> exercises the grid / megacore path
    input_size = 16
    hidden_size = 32
    latent_size = 8
    num_speakers = 4
    condition_size = 6

    key = jax.random.PRNGKey(0)
    k_x, k_c, k_s, k_e, k_p = jax.random.split(key, 5)

    x = jax.random.normal(k_x, (batch, input_size), jnp.float32)
    condition = jax.random.normal(k_c, (batch, condition_size), jnp.float32)
    speaker = jax.random.randint(k_s, (batch, 1), 0, num_speakers, jnp.int32)
    eps = jax.random.normal(k_e, (batch, latent_size), jnp.float32)

    params = init_params(k_p, input_size, hidden_size, latent_size,
                         num_speakers, condition_size)

    out, mean, logvar = conditional_vae_forward(x, condition, speaker, eps, params)
    jax.block_until_ready((out, mean, logvar))

    ref_out, ref_mean, ref_logvar = reference_forward(x, condition, speaker, eps, params)
    assert jnp.allclose(out, ref_out, atol=1e-3, rtol=1e-3)
    assert jnp.allclose(mean, ref_mean, atol=1e-3, rtol=1e-3)
    assert jnp.allclose(logvar, ref_logvar, atol=1e-3, rtol=1e-3)

    print("KERNEL_OK")
</pallas_src>

<mosaic_0001>
module attributes {stable_mosaic.version = 11 : i64} {
  func.func @cvae_kernel(%arg0: i32, %arg1: memref<8x22xf32, #tpu.memory_space<vmem>>, %arg2: memref<8x1xi32, #tpu.memory_space<vmem>>, %arg3: memref<8x8xf32, #tpu.memory_space<vmem>>, %arg4: memref<22x64xbf16, #tpu.memory_space<vmem>>, %arg5: memref<1x64xf32, #tpu.memory_space<vmem>>, %arg6: memref<3x32x32xbf16, #tpu.memory_space<vmem>>, %arg7: memref<3x1x32xf32, #tpu.memory_space<vmem>>, %arg8: memref<32x16xbf16, #tpu.memory_space<vmem>>, %arg9: memref<1x16xf32, #tpu.memory_space<vmem>>, %arg10: memref<5x32xf32, #tpu.memory_space<vmem>>, %arg11: memref<8x32xbf16, #tpu.memory_space<vmem>>, %arg12: memref<1x32xf32, #tpu.memory_space<vmem>>, %arg13: memref<3x32x32xbf16, #tpu.memory_space<vmem>>, %arg14: memref<3x1x32xf32, #tpu.memory_space<vmem>>, %arg15: memref<32x16xbf16, #tpu.memory_space<vmem>>, %arg16: memref<1x16xf32, #tpu.memory_space<vmem>>, %arg17: memref<4x1x32xf32, #tpu.memory_space<vmem>>, %arg18: memref<4x1x32xf32, #tpu.memory_space<vmem>>, %arg19: memref<8x16xf32, #tpu.memory_space<vmem>>, %arg20: memref<8x16xf32, #tpu.memory_space<vmem>>) attributes {dimension_semantics = [#tpu.dimension_semantics<parallel>], iteration_bounds = array<i64: 2>, scalar_prefetch = 0 : i64, scratch_operands = 0 : i64, tpu.core_type = #tpu.core_type<tc>, window_params = [{transform_indices = @transform_0, window_bounds = array<i64: 8, 22>}, {transform_indices = @transform_1, window_bounds = array<i64: 8, 1>}, {transform_indices = @transform_2, window_bounds = array<i64: 8, 8>}, {pipeline_mode = #tpu.pipeline_mode<synchronous>, transform_indices = @transform_3, window_bounds = array<i64: 22, 64>}, {pipeline_mode = #tpu.pipeline_mode<synchronous>, transform_indices = @transform_4, window_bounds = array<i64: 1, 64>}, {pipeline_mode = #tpu.pipeline_mode<synchronous>, transform_indices = @transform_5, window_bounds = array<i64: 3, 32, 32>}, {pipeline_mode = #tpu.pipeline_mode<synchronous>, transform_indices = @transform_6, window_bounds = array<i64: 3, 1, 32>}, {pipeline_mode = #tpu.pipeline_mode<synchronous>, transform_indices = @transform_7, window_bounds = array<i64: 32, 16>}, {pipeline_mode = #tpu.pipeline_mode<synchronous>, transform_indices = @transform_8, window_bounds = array<i64: 1, 16>}, {pipeline_mode = #tpu.pipeline_mode<synchronous>, transform_indices = @transform_9, window_bounds = array<i64: 5, 32>}, {pipeline_mode = #tpu.pipeline_mode<synchronous>, transform_indices = @transform_10, window_bounds = array<i64: 8, 32>}, {pipeline_mode = #tpu.pipeline_mode<synchronous>, transform_indices = @transform_11, window_bounds = array<i64: 1, 32>}, {pipeline_mode = #tpu.pipeline_mode<synchronous>, transform_indices = @transform_12, window_bounds = array<i64: 3, 32, 32>}, {pipeline_mode = #tpu.pipeline_mode<synchronous>, transform_indices = @transform_13, window_bounds = array<i64: 3, 1, 32>}, {pipeline_mode = #tpu.pipeline_mode<synchronous>, transform_indices = @transform_14, window_bounds = array<i64: 32, 16>}, {pipeline_mode = #tpu.pipeline_mode<synchronous>, transform_indices = @transform_15, window_bounds = array<i64: 1, 16>}, {pipeline_mode = #tpu.pipeline_mode<synchronous>, transform_indices = @transform_16, window_bounds = array<i64: 4, 1, 32>}, {pipeline_mode = #tpu.pipeline_mode<synchronous>, transform_indices = @transform_17, window_bounds = array<i64: 4, 1, 32>}, {transform_indices = @transform_18, window_bounds = array<i64: 8, 16>}, {transform_indices = @transform_19, window_bounds = array<i64: 8, 16>}]} {
    %c0 = arith.constant 0 : index
    %c0_0 = arith.constant 0 : index
    %0 = vector.load %arg1[%c0, %c0_0] : memref<8x22xf32, #tpu.memory_space<vmem>>, vector<8x22xf32>
    %c0_1 = arith.constant 0 : index
    %c0_2 = arith.constant 0 : index
    %1 = vector.load %arg4[%c0_1, %c0_2] : memref<22x64xbf16, #tpu.memory_space<vmem>>, vector<22x64xbf16>
    %2 = arith.truncf %0 : vector<8x22xf32> to vector<8x22xbf16>
    %cst = arith.constant dense<0.000000e+00> : vector<8x64xf32>
    %3 = tpu.matmul %2, %1, %cst {dimension_numbers = #tpu.dot_dimension_numbers<[1], [0], [0], [1], [0, 0, 1, 1], [], []>} : vector<8x22xbf16>, vector<22x64xbf16>, vector<8x64xf32> -> vector<8x64xf32>
    %c0_3 = arith.constant 0 : index
    %c0_4 = arith.constant 0 : index
    %4 = vector.load %arg5[%c0_3, %c0_4] : memref<1x64xf32, #tpu.memory_space<vmem>>, vector<1x64xf32>
    %5 = vector.broadcast %4 : vector<1x64xf32> to vector<8x64xf32>
    %6 = arith.addf %3, %5 : vector<8x64xf32>
    %7 = vector.extract_strided_slice %6 {offsets = [0, 0], sizes = [8, 32], strides = [1, 1]} : vector<8x64xf32> to vector<8x32xf32>
    %cst_5 = arith.constant 0.000000e+00 : f32
    %8 = vector.broadcast %cst_5 : f32 to vector<8x32xf32>
    %9 = arith.maximumf %7, %8 : vector<8x32xf32>
    %10 = vector.extract_strided_slice %6 {offsets = [0, 32], sizes = [8, 32], strides = [1, 1]} : vector<8x64xf32> to vector<8x32xf32>
    %cst_6 = arith.constant 0.000000e+00 : f32
    %11 = vector.broadcast %cst_6 : f32 to vector<8x32xf32>
    %12 = arith.maximumf %10, %11 : vector<8x32xf32>
    %c0_7 = arith.constant 0 : index
    %c0_8 = arith.constant 0 : index
    %c0_9 = arith.constant 0 : index
    %13 = vector.load %arg6[%c0_7, %c0_8, %c0_9] : memref<3x32x32xbf16, #tpu.memory_space<vmem>>, vector<1x32x32xbf16>
    %14 = vector.shape_cast %13 : vector<1x32x32xbf16> to vector<32x32xbf16>
    %15 = arith.truncf %9 : vector<8x32xf32> to vector<8x32xbf16>
    %cst_10 = arith.constant dense<0.000000e+00> : vector<8x32xf32>
    %16 = tpu.matmul %15, %14, %cst_10 {dimension_numbers = #tpu.dot_dimension_numbers<[1], [0], [0], [1], [0, 0, 1, 1], [], []>} : vector<8x32xbf16>, vector<32x32xbf16>, vector<8x32xf32> -> vector<8x32xf32>
    %c0_11 = arith.constant 0 : index
    %c0_12 = arith.constant 0 : index
    %c0_13 = arith.constant 0 : index
    %17 = vector.load %arg7[%c0_11, %c0_12, %c0_13] : memref<3x1x32xf32, #tpu.memory_space<vmem>>, vector<1x1x32xf32>
    %18 = vector.shape_cast %17 : vector<1x1x32xf32> to vector<1x32xf32>
    %19 = vector.broadcast %18 : vector<1x32xf32> to vector<8x32xf32>
    %20 = arith.addf %16, %19 : vector<8x32xf32>
    %cst_14 = arith.constant 0.000000e+00 : f32
    %21 = vector.broadcast %cst_14 : f32 to vector<8x32xf32>
    %22 = arith.maximumf %20, %21 : vector<8x32xf32>
    %23 = arith.addf %9, %22 : vector<8x32xf32>
    %c1 = arith.constant 1 : index
    %c0_15 = arith.constant 0 : index
    %c0_16 = arith.constant 0 : index
    %24 = vector.load %arg6[%c1, %c0_15, %c0_16] : memref<3x32x32xbf16, #tpu.memory_space<vmem>>, vector<1x32x32xbf16>
    %25 = vector.shape_cast %24 : vector<1x32x32xbf16> to vector<32x32xbf16>
    %26 = arith.truncf %23 : vector<8x32xf32> to vector<8x32xbf16>
    %cst_17 = arith.constant dense<0.000000e+00> : vector<8x32xf32>
    %27 = tpu.matmul %26, %25, %cst_17 {dimension_numbers = #tpu.dot_dimension_numbers<[1], [0], [0], [1], [0, 0, 1, 1], [], []>} : vector<8x32xbf16>, vector<32x32xbf16>, vector<8x32xf32> -> vector<8x32xf32>
    %c1_18 = arith.constant 1 : index
    %c0_19 = arith.constant 0 : index
    %c0_20 = arith.constant 0 : index
    %28 = vector.load %arg7[%c1_18, %c0_19, %c0_20] : memref<3x1x32xf32, #tpu.memory_space<vmem>>, vector<1x1x32xf32>
    %29 = vector.shape_cast %28 : vector<1x1x32xf32> to vector<1x32xf32>
    %30 = vector.broadcast %29 : vector<1x32xf32> to vector<8x32xf32>
    %31 = arith.addf %27, %30 : vector<8x32xf32>
    %cst_21 = arith.constant 0.000000e+00 : f32
    %32 = vector.broadcast %cst_21 : f32 to vector<8x32xf32>
    %33 = arith.maximumf %31, %32 : vector<8x32xf32>
    %34 = arith.addf %23, %33 : vector<8x32xf32>
    %c2 = arith.constant 2 : index
    %c0_22 = arith.constant 0 : index
    %c0_23 = arith.constant 0 : index
    %35 = vector.load %arg6[%c2, %c0_22, %c0_23] : memref<3x32x32xbf16, #tpu.memory_space<vmem>>, vector<1x32x32xbf16>
    %36 = vector.shape_cast %35 : vector<1x32x32xbf16> to vector<32x32xbf16>
    %37 = arith.truncf %34 : vector<8x32xf32> to vector<8x32xbf16>
    %cst_24 = arith.constant dense<0.000000e+00> : vector<8x32xf32>
    %38 = tpu.matmul %37, %36, %cst_24 {dimension_numbers = #tpu.dot_dimension_numbers<[1], [0], [0], [1], [0, 0, 1, 1], [], []>} : vector<8x32xbf16>, vector<32x32xbf16>, vector<8x32xf32> -> vector<8x32xf32>
    %c2_25 = arith.constant 2 : index
    %c0_26 = arith.constant 0 : index
    %c0_27 = arith.constant 0 : index
    %39 = vector.load %arg7[%c2_25, %c0_26, %c0_27] : memref<3x1x32xf32, #tpu.memory_space<vmem>>, vector<1x1x32xf32>
    %40 = vector.shape_cast %39 : vector<1x1x32xf32> to vector<1x32xf32>
    %41 = vector.broadcast %40 : vector<1x32xf32> to vector<8x32xf32>
    %42 = arith.addf %38, %41 : vector<8x32xf32>
    %cst_28 = arith.constant 0.000000e+00 : f32
    %43 = vector.broadcast %cst_28 : f32 to vector<8x32xf32>
    %44 = arith.maximumf %42, %43 : vector<8x32xf32>
    %45 = arith.addf %34, %44 : vector<8x32xf32>
    %c0_29 = arith.constant 0 : index
    %c0_30 = arith.constant 0 : index
    %46 = vector.load %arg8[%c0_29, %c0_30] : memref<32x16xbf16, #tpu.memory_space<vmem>>, vector<32x16xbf16>
    %47 = arith.truncf %45 : vector<8x32xf32> to vector<8x32xbf16>
    %cst_31 = arith.constant dense<0.000000e+00> : vector<8x16xf32>
    %48 = tpu.matmul %47, %46, %cst_31 {dimension_numbers = #tpu.dot_dimension_numbers<[1], [0], [0], [1], [0, 0, 1, 1], [], []>} : vector<8x32xbf16>, vector<32x16xbf16>, vector<8x16xf32> -> vector<8x16xf32>
    %c0_32 = arith.constant 0 : index
    %c0_33 = arith.constant 0 : index
    %49 = vector.load %arg9[%c0_32, %c0_33] : memref<1x16xf32, #tpu.memory_space<vmem>>, vector<1x16xf32>
    %50 = vector.broadcast %49 : vector<1x16xf32> to vector<8x16xf32>
    %51 = arith.addf %48, %50 : vector<8x16xf32>
    %c0_34 = arith.constant 0 : index
    %c0_35 = arith.constant 0 : index
    %52 = vector.load %arg20[%c0_34, %c0_35] : memref<8x16xf32, #tpu.memory_space<vmem>>, vector<8x16xf32>
    tpu.vector_store %arg20[%c0_34, %c0_35], %51 {strides = array<i32>} : memref<8x16xf32, #tpu.memory_space<vmem>>, vector<8x16xf32>,
    %53 = vector.extract_strided_slice %51 {offsets = [0, 0], sizes = [8, 8], strides = [1, 1]} : vector<8x16xf32> to vector<8x8xf32>
    %54 = vector.extract_strided_slice %51 {offsets = [0, 8], sizes = [8, 8], strides = [1, 1]} : vector<8x16xf32> to vector<8x8xf32>
    %c0_36 = arith.constant 0 : index
    %c0_37 = arith.constant 0 : index
    %55 = vector.load %arg3[%c0_36, %c0_37] : memref<8x8xf32, #tpu.memory_space<vmem>>, vector<8x8xf32>
    %cst_38 = arith.constant 5.000000e-01 : f32
    %56 = vector.broadcast %cst_38 : f32 to vector<8x8xf32>
    %57 = arith.mulf %56, %54 : vector<8x8xf32>
    %58 = math.exp %57 : vector<8x8xf32>
    %59 = arith.mulf %55, %58 : vector<8x8xf32>
    %60 = arith.addf %53, %59 : vector<8x8xf32>
    %c0_39 = arith.constant 0 : index
    %c0_40 = arith.constant 0 : index
    %61 = vector.load %arg11[%c0_39, %c0_40] : memref<8x32xbf16, #tpu.memory_space<vmem>>, vector<8x32xbf16>
    %62 = arith.truncf %60 : vector<8x8xf32> to vector<8x8xbf16>
    %cst_41 = arith.constant dense<0.000000e+00> : vector<8x32xf32>
    %63 = tpu.matmul %62, %61, %cst_41 {dimension_numbers = #tpu.dot_dimension_numbers<[1], [0], [0], [1], [0, 0, 1, 1], [], []>} : vector<8x8xbf16>, vector<8x32xbf16>, vector<8x32xf32> -> vector<8x32xf32>
    %c0_42 = arith.constant 0 : index
    %c0_43 = arith.constant 0 : index
    %64 = vector.load %arg12[%c0_42, %c0_43] : memref<1x32xf32, #tpu.memory_space<vmem>>, vector<1x32xf32>
    %65 = vector.broadcast %64 : vector<1x32xf32> to vector<8x32xf32>
    %66 = arith.addf %63, %65 : vector<8x32xf32>
    %cst_44 = arith.constant 0.000000e+00 : f32
    %67 = vector.broadcast %cst_44 : f32 to vector<8x32xf32>
    %68 = arith.maximumf %66, %67 : vector<8x32xf32>
    %69 = arith.addf %68, %12 : vector<8x32xf32>
    %c0_45 = arith.constant 0 : index
    %c0_46 = arith.constant 0 : index
    %70 = vector.load %arg2[%c0_45, %c0_46] : memref<8x1xi32, #tpu.memory_space<vmem>>, vector<8x1xi32>
    %71 = tpu.iota {dimensions = array<i32: 1>} : vector<8x5xi32>
    %72 = vector.broadcast %70 : vector<8x1xi32> to vector<8x5xi32>
    %73 = arith.cmpi eq, %71, %72 : vector<8x5xi32>
    %74 = arith.extui %73 : vector<8x5xi1> to vector<8x5xi32>
    %75 = arith.sitofp %74 : vector<8x5xi32> to vector<8x5xf32>
    %c0_47 = arith.constant 0 : index
    %c0_48 = arith.constant 0 : index
    %76 = vector.load %arg10[%c0_47, %c0_48] : memref<5x32xf32, #tpu.memory_space<vmem>>, vector<5x32xf32>
    %cst_49 = arith.constant dense<0.000000e+00> : vector<8x32xf32>
    %77 = tpu.matmul %75, %76, %cst_49 {dimension_numbers = #tpu.dot_dimension_numbers<[1], [0], [0], [1], [0, 0, 1, 1], [], []>} : vector<8x5xf32>, vector<5x32xf32>, vector<8x32xf32> -> vector<8x32xf32>
    %78 = arith.addf %69, %77 : vector<8x32xf32>
    %c0_50 = arith.constant 0 : index
    %c0_51 = arith.constant 0 : index
    %c0_52 = arith.constant 0 : index
    %79 = vector.load %arg13[%c0_50, %c0_51, %c0_52] : memref<3x32x32xbf16, #tpu.memory_space<vmem>>, vector<1x32x32xbf16>
    %80 = vector.shape_cast %79 : vector<1x32x32xbf16> to vector<32x32xbf16>
    %81 = arith.truncf %78 : vector<8x32xf32> to vector<8x32xbf16>
    %cst_53 = arith.constant dense<0.000000e+00> : vector<8x32xf32>
    %82 = tpu.matmul %81, %80, %cst_53 {dimension_numbers = #tpu.dot_dimension_numbers<[1], [0], [0], [1], [0, 0, 1, 1], [], []>} : vector<8x32xbf16>, vector<32x32xbf16>, vector<8x32xf32> -> vector<8x32xf32>
    %c0_54 = arith.constant 0 : index
    %c0_55 = arith.constant 0 : index
    %c0_56 = arith.constant 0 : index
    %83 = vector.load %arg14[%c0_54, %c0_55, %c0_56] : memref<3x1x32xf32, #tpu.memory_space<vmem>>, vector<1x1x32xf32>
    %84 = vector.shape_cast %83 : vector<1x1x32xf32> to vector<1x32xf32>
    %85 = vector.broadcast %84 : vector<1x32xf32> to vector<8x32xf32>
    %86 = arith.addf %82, %85 : vector<8x32xf32>
    %cst_57 = arith.constant dense<0.000000e+00> : vector<8xf32>
    %87 = vector.multi_reduction <add>, %86, %cst_57 [1] : vector<8x32xf32> to vector<8xf32>
    %88 = vector.shape_cast %87 : vector<8xf32> to vector<8x1xf32>
    %cst_58 = arith.constant 3.200000e+01 : f32
    %89 = vector.broadcast %cst_58 : f32 to vector<8x1xf32>
    %90 = arith.divf %88, %89 : vector<8x1xf32>
    %91 = vector.broadcast %90 : vector<8x1xf32> to vector<8x32xf32>
    %92 = arith.subf %86, %91 : vector<8x32xf32>
    %93 = vector.broadcast %90 : vector<8x1xf32> to vector<8x32xf32>
    %94 = arith.subf %86, %93 : vector<8x32xf32>
    %95 = arith.mulf %92, %94 : vector<8x32xf32>
    %cst_59 = arith.constant dense<0.000000e+00> : vector<8xf32>
    %96 = vector.multi_reduction <add>, %95, %cst_59 [1] : vector<8x32xf32> to vector<8xf32>
    %97 = vector.shape_cast %96 : vector<8xf32> to vector<8x1xf32>
    %cst_60 = arith.constant 3.200000e+01 : f32
    %98 = vector.broadcast %cst_60 : f32 to vector<8x1xf32>
    %99 = arith.divf %97, %98 : vector<8x1xf32>
    %100 = vector.broadcast %90 : vector<8x1xf32> to vector<8x32xf32>
    %101 = arith.subf %86, %100 : vector<8x32xf32>
    %cst_61 = arith.constant 9.99999974E-6 : f32
    %102 = vector.broadcast %cst_61 : f32 to vector<8x1xf32>
    %103 = arith.addf %99, %102 : vector<8x1xf32>
    %104 = math.rsqrt %103 : vector<8x1xf32>
    %105 = vector.broadcast %104 : vector<8x1xf32> to vector<8x32xf32>
    %106 = arith.mulf %101, %105 : vector<8x32xf32>
    %c0_62 = arith.constant 0 : index
    %c0_63 = arith.constant 0 : index
    %c0_64 = arith.constant 0 : index
    %107 = vector.load %arg17[%c0_62, %c0_63, %c0_64] : memref<4x1x32xf32, #tpu.memory_space<vmem>>, vector<1x1x32xf32>
    %108 = vector.shape_cast %107 : vector<1x1x32xf32> to vector<1x32xf32>
    %109 = vector.broadcast %108 : vector<1x32xf32> to vector<8x32xf32>
    %110 = arith.mulf %106, %109 : vector<8x32xf32>
    %c0_65 = arith.constant 0 : index
    %c0_66 = arith.constant 0 : index
    %c0_67 = arith.constant 0 : index
    %111 = vector.load %arg18[%c0_65, %c0_66, %c0_67] : memref<4x1x32xf32, #tpu.memory_space<vmem>>, vector<1x1x32xf32>
    %112 = vector.shape_cast %111 : vector<1x1x32xf32> to vector<1x32xf32>
    %113 = vector.broadcast %112 : vector<1x32xf32> to vector<8x32xf32>
    %114 = arith.addf %110, %113 : vector<8x32xf32>
    %cst_68 = arith.constant 0.000000e+00 : f32
    %115 = vector.broadcast %cst_68 : f32 to vector<8x32xf32>
    %116 = arith.maximumf %114, %115 : vector<8x32xf32>
    %117 = arith.addf %78, %116 : vector<8x32xf32>
    %c1_69 = arith.constant 1 : index
    %c0_70 = arith.constant 0 : index
    %c0_71 = arith.constant 0 : index
    %118 = vector.load %arg13[%c1_69, %c0_70, %c0_71] : memref<3x32x32xbf16, #tpu.memory_space<vmem>>, vector<1x32x32xbf16>
    %119 = vector.shape_cast %118 : vector<1x32x32xbf16> to vector<32x32xbf16>
    %120 = arith.truncf %117 : vector<8x32xf32> to vector<8x32xbf16>
    %cst_72 = arith.constant dense<0.000000e+00> : vector<8x32xf32>
    %121 = tpu.matmul %120, %119, %cst_72 {dimension_numbers = #tpu.dot_dimension_numbers<[1], [0], [0], [1], [0, 0, 1, 1], [], []>} : vector<8x32xbf16>, vector<32x32xbf16>, vector<8x32xf32> -> vector<8x32xf32>
    %c1_73 = arith.constant 1 : index
    %c0_74 = arith.constant 0 : index
    %c0_75 = arith.constant 0 : index
    %122 = vector.load %arg14[%c1_73, %c0_74, %c0_75] : memref<3x1x32xf32, #tpu.memory_space<vmem>>, vector<1x1x32xf32>
    %123 = vector.shape_cast %122 : vector<1x1x32xf32> to vector<1x32xf32>
    %124 = vector.broadcast %123 : vector<1x32xf32> to vector<8x32xf32>
    %125 = arith.addf %121, %124 : vector<8x32xf32>
    %cst_76 = arith.constant dense<0.000000e+00> : vector<8xf32>
    %126 = vector.multi_reduction <add>, %125, %cst_76 [1] : vector<8x32xf32> to vector<8xf32>
    %127 = vector.shape_cast %126 : vector<8xf32> to vector<8x1xf32>
    %cst_77 = arith.constant 3.200000e+01 : f32
    %128 = vector.broadcast %cst_77 : f32 to vector<8x1xf32>
    %129 = arith.divf %127, %128 : vector<8x1xf32>
    %130 = vector.broadcast %129 : vector<8x1xf32> to vector<8x32xf32>
    %131 = arith.subf %125, %130 : vector<8x32xf32>
    %132 = vector.broadcast %129 : vector<8x1xf32> to vector<8x32xf32>
    %133 = arith.subf %125, %132 : vector<8x32xf32>
    %134 = arith.mulf %131, %133 : vector<8x32xf32>
    %cst_78 = arith.constant dense<0.000000e+00> : vector<8xf32>
    %135 = vector.multi_reduction <add>, %134, %cst_78 [1] : vector<8x32xf32> to vector<8xf32>
    %136 = vector.shape_cast %135 : vector<8xf32> to vector<8x1xf32>
    %cst_79 = arith.constant 3.200000e+01 : f32
    %137 = vector.broadcast %cst_79 : f32 to vector<8x1xf32>
    %138 = arith.divf %136, %137 : vector<8x1xf32>
    %139 = vector.broadcast %129 : vector<8x1xf32> to vector<8x32xf32>
    %140 = arith.subf %125, %139 : vector<8x32xf32>
    %cst_80 = arith.constant 9.99999974E-6 : f32
    %141 = vector.broadcast %cst_80 : f32 to vector<8x1xf32>
    %142 = arith.addf %138, %141 : vector<8x1xf32>
    %143 = math.rsqrt %142 : vector<8x1xf32>
    %144 = vector.broadcast %143 : vector<8x1xf32> to vector<8x32xf32>
    %145 = arith.mulf %140, %144 : vector<8x32xf32>
    %c1_81 = arith.constant 1 : index
    %c0_82 = arith.constant 0 : index
    %c0_83 = arith.constant 0 : index
    %146 = vector.load %arg17[%c1_81, %c0_82, %c0_83] : memref<4x1x32xf32, #tpu.memory_space<vmem>>, vector<1x1x32xf32>
    %147 = vector.shape_cast %146 : vector<1x1x32xf32> to vector<1x32xf32>
    %148 = vector.broadcast %147 : vector<1x32xf32> to vector<8x32xf32>
    %149 = arith.mulf %145, %148 : vector<8x32xf32>
    %c1_84 = arith.constant 1 : index
    %c0_85 = arith.constant 0 : index
    %c0_86 = arith.constant 0 : index
    %150 = vector.load %arg18[%c1_84, %c0_85, %c0_86] : memref<4x1x32xf32, #tpu.memory_space<vmem>>, vector<1x1x32xf32>
    %151 = vector.shape_cast %150 : vector<1x1x32xf32> to vector<1x32xf32>
    %152 = vector.broadcast %151 : vector<1x32xf32> to vector<8x32xf32>
    %153 = arith.addf %149, %152 : vector<8x32xf32>
    %cst_87 = arith.constant 0.000000e+00 : f32
    %154 = vector.broadcast %cst_87 : f32 to vector<8x32xf32>
    %155 = arith.maximumf %153, %154 : vector<8x32xf32>
    %156 = arith.addf %117, %155 : vector<8x32xf32>
    %c2_88 = arith.constant 2 : index
    %c0_89 = arith.constant 0 : index
    %c0_90 = arith.constant 0 : index
    %157 = vector.load %arg13[%c2_88, %c0_89, %c0_90] : memref<3x32x32xbf16, #tpu.memory_space<vmem>>, vector<1x32x32xbf16>
    %158 = vector.shape_cast %157 : vector<1x32x32xbf16> to vector<32x32xbf16>
    %159 = arith.truncf %156 : vector<8x32xf32> to vector<8x32xbf16>
    %cst_91 = arith.constant dense<0.000000e+00> : vector<8x32xf32>
    %160 = tpu.matmul %159, %158, %cst_91 {dimension_numbers = #tpu.dot_dimension_numbers<[1], [0], [0], [1], [0, 0, 1, 1], [], []>} : vector<8x32xbf16>, vector<32x32xbf16>, vector<8x32xf32> -> vector<8x32xf32>
    %c2_92 = arith.constant 2 : index
    %c0_93 = arith.constant 0 : index
    %c0_94 = arith.constant 0 : index
    %161 = vector.load %arg14[%c2_92, %c0_93, %c0_94] : memref<3x1x32xf32, #tpu.memory_space<vmem>>, vector<1x1x32xf32>
    %162 = vector.shape_cast %161 : vector<1x1x32xf32> to vector<1x32xf32>
    %163 = vector.broadcast %162 : vector<1x32xf32> to vector<8x32xf32>
    %164 = arith.addf %160, %163 : vector<8x32xf32>
    %cst_95 = arith.constant dense<0.000000e+00> : vector<8xf32>
    %165 = vector.multi_reduction <add>, %164, %cst_95 [1] : vector<8x32xf32> to vector<8xf32>
    %166 = vector.shape_cast %165 : vector<8xf32> to vector<8x1xf32>
    %cst_96 = arith.constant 3.200000e+01 : f32
    %167 = vector.broadcast %cst_96 : f32 to vector<8x1xf32>
    %168 = arith.divf %166, %167 : vector<8x1xf32>
    %169 = vector.broadcast %168 : vector<8x1xf32> to vector<8x32xf32>
    %170 = arith.subf %164, %169 : vector<8x32xf32>
    %171 = vector.broadcast %168 : vector<8x1xf32> to vector<8x32xf32>
    %172 = arith.subf %164, %171 : vector<8x32xf32>
    %173 = arith.mulf %170, %172 : vector<8x32xf32>
    %cst_97 = arith.constant dense<0.000000e+00> : vector<8xf32>
    %174 = vector.multi_reduction <add>, %173, %cst_97 [1] : vector<8x32xf32> to vector<8xf32>
    %175 = vector.shape_cast %174 : vector<8xf32> to vector<8x1xf32>
    %cst_98 = arith.constant 3.200000e+01 : f32
    %176 = vector.broadcast %cst_98 : f32 to vector<8x1xf32>
    %177 = arith.divf %175, %176 : vector<8x1xf32>
    %178 = vector.broadcast %168 : vector<8x1xf32> to vector<8x32xf32>
    %179 = arith.subf %164, %178 : vector<8x32xf32>
    %cst_99 = arith.constant 9.99999974E-6 : f32
    %180 = vector.broadcast %cst_99 : f32 to vector<8x1xf32>
    %181 = arith.addf %177, %180 : vector<8x1xf32>
    %182 = math.rsqrt %181 : vector<8x1xf32>
    %183 = vector.broadcast %182 : vector<8x1xf32> to vector<8x32xf32>
    %184 = arith.mulf %179, %183 : vector<8x32xf32>
    %c2_100 = arith.constant 2 : index
    %c0_101 = arith.constant 0 : index
    %c0_102 = arith.constant 0 : index
    %185 = vector.load %arg17[%c2_100, %c0_101, %c0_102] : memref<4x1x32xf32, #tpu.memory_space<vmem>>, vector<1x1x32xf32>
    %186 = vector.shape_cast %185 : vector<1x1x32xf32> to vector<1x32xf32>
    %187 = vector.broadcast %186 : vector<1x32xf32> to vector<8x32xf32>
    %188 = arith.mulf %184, %187 : vector<8x32xf32>
    %c2_103 = arith.constant 2 : index
    %c0_104 = arith.constant 0 : index
    %c0_105 = arith.constant 0 : index
    %189 = vector.load %arg18[%c2_103, %c0_104, %c0_105] : memref<4x1x32xf32, #tpu.memory_space<vmem>>, vector<1x1x32xf32>
    %190 = vector.shape_cast %189 : vector<1x1x32xf32> to vector<1x32xf32>
    %191 = vector.broadcast %190 : vector<1x32xf32> to vector<8x32xf32>
    %192 = arith.addf %188, %191 : vector<8x32xf32>
    %cst_106 = arith.constant 0.000000e+00 : f32
    %193 = vector.broadcast %cst_106 : f32 to vector<8x32xf32>
    %194 = arith.maximumf %192, %193 : vector<8x32xf32>
    %195 = arith.addf %156, %194 : vector<8x32xf32>
    %cst_107 = arith.constant dense<0.000000e+00> : vector<8xf32>
    %196 = vector.multi_reduction <add>, %195, %cst_107 [1] : vector<8x32xf32> to vector<8xf32>
    %197 = vector.shape_cast %196 : vector<8xf32> to vector<8x1xf32>
    %cst_108 = arith.constant 3.200000e+01 : f32
    %198 = vector.broadcast %cst_108 : f32 to vector<8x1xf32>
    %199 = arith.divf %197, %198 : vector<8x1xf32>
    %200 = vector.broadcast %199 : vector<8x1xf32> to vector<8x32xf32>
    %201 = arith.subf %195, %200 : vector<8x32xf32>
    %202 = vector.broadcast %199 : vector<8x1xf32> to vector<8x32xf32>
    %203 = arith.subf %195, %202 : vector<8x32xf32>
    %204 = arith.mulf %201, %203 : vector<8x32xf32>
    %cst_109 = arith.constant dense<0.000000e+00> : vector<8xf32>
    %205 = vector.multi_reduction <add>, %204, %cst_109 [1] : vector<8x32xf32> to vector<8xf32>
    %206 = vector.shape_cast %205 : vector<8xf32> to vector<8x1xf32>
    %cst_110 = arith.constant 3.200000e+01 : f32
    %207 = vector.broadcast %cst_110 : f32 to vector<8x1xf32>
    %208 = arith.divf %206, %207 : vector<8x1xf32>
    %209 = vector.broadcast %199 : vector<8x1xf32> to vector<8x32xf32>
    %210 = arith.subf %195, %209 : vector<8x32xf32>
    %cst_111 = arith.constant 9.99999974E-6 : f32
    %211 = vector.broadcast %cst_111 : f32 to vector<8x1xf32>
    %212 = arith.addf %208, %211 : vector<8x1xf32>
    %213 = math.rsqrt %212 : vector<8x1xf32>
    %214 = vector.broadcast %213 : vector<8x1xf32> to vector<8x32xf32>
    %215 = arith.mulf %210, %214 : vector<8x32xf32>
    %c3 = arith.constant 3 : index
    %c0_112 = arith.constant 0 : index
    %c0_113 = arith.constant 0 : index
    %216 = vector.load %arg17[%c3, %c0_112, %c0_113] : memref<4x1x32xf32, #tpu.memory_space<vmem>>, vector<1x1x32xf32>
    %217 = vector.shape_cast %216 : vector<1x1x32xf32> to vector<1x32xf32>
    %218 = vector.broadcast %217 : vector<1x32xf32> to vector<8x32xf32>
    %219 = arith.mulf %215, %218 : vector<8x32xf32>
    %c3_114 = arith.constant 3 : index
    %c0_115 = arith.constant 0 : index
    %c0_116 = arith.constant 0 : index
    %220 = vector.load %arg18[%c3_114, %c0_115, %c0_116] : memref<4x1x32xf32, #tpu.memory_space<vmem>>, vector<1x1x32xf32>
    %221 = vector.shape_cast %220 : vector<1x1x32xf32> to vector<1x32xf32>
    %222 = vector.broadcast %221 : vector<1x32xf32> to vector<8x32xf32>
    %223 = arith.addf %219, %222 : vector<8x32xf32>
    %c0_117 = arith.constant 0 : index
    %c0_118 = arith.constant 0 : index
    %224 = vector.load %arg15[%c0_117, %c0_118] : memref<32x16xbf16, #tpu.memory_space<vmem>>, vector<32x16xbf16>
    %225 = arith.truncf %223 : vector<8x32xf32> to vector<8x32xbf16>
    %cst_119 = arith.constant dense<0.000000e+00> : vector<8x16xf32>
    %226 = tpu.matmul %225, %224, %cst_119 {dimension_numbers = #tpu.dot_dimension_numbers<[1], [0], [0], [1], [0, 0, 1, 1], [], []>} : vector<8x32xbf16>, vector<32x16xbf16>, vector<8x16xf32> -> vector<8x16xf32>
    %c0_120 = arith.constant 0 : index
    %c0_121 = arith.constant 0 : index
    %227 = vector.load %arg16[%c0_120, %c0_121] : memref<1x16xf32, #tpu.memory_space<vmem>>, vector<1x16xf32>
    %228 = vector.broadcast %227 : vector<1x16xf32> to vector<8x16xf32>
    %229 = arith.addf %226, %228 : vector<8x16xf32>
    %c0_122 = arith.constant 0 : index
    %c0_123 = arith.constant 0 : index
    %230 = vector.load %arg19[%c0_122, %c0_123] : memref<8x16xf32, #tpu.memory_space<vmem>>, vector<8x16xf32>
    tpu.vector_store %arg19[%c0_122, %c0_123], %229 {strides = array<i32>} : memref<8x16xf32, #tpu.memory_space<vmem>>, vector<8x16xf32>,
    return
  }
  func.func @transform_0(%arg0: i32) -> (i32, i32) {
    %c0_i32 = arith.constant 0 : i32
    %c0_i32_0 = arith.constant 0 : i32
    return %arg0, %c0_i32 : i32, i32
  }
  func.func @transform_1(%arg0: i32) -> (i32, i32) {
    %c0_i32 = arith.constant 0 : i32
    %c0_i32_0 = arith.constant 0 : i32
    return %arg0, %c0_i32 : i32, i32
  }
  func.func @transform_2(%arg0: i32) -> (i32, i32) {
    %c0_i32 = arith.constant 0 : i32
    %c0_i32_0 = arith.constant 0 : i32
    return %arg0, %c0_i32 : i32, i32
  }
  func.func @transform_3(%arg0: i32) -> (i32, i32) {
    %c0_i32 = arith.constant 0 : i32
    %c0_i32_0 = arith.constant 0 : i32
    %c0_i32_1 = arith.constant 0 : i32
    return %c0_i32, %c0_i32_0 : i32, i32
  }
  func.func @transform_4(%arg0: i32) -> (i32, i32) {
    %c0_i32 = arith.constant 0 : i32
    %c0_i32_0 = arith.constant 0 : i32
    %c0_i32_1 = arith.constant 0 : i32
    return %c0_i32, %c0_i32_0 : i32, i32
  }
  func.func @transform_5(%arg0: i32) -> (i32, i32, i32) {
    %c0_i32 = arith.constant 0 : i32
    %c0_i32_0 = arith.constant 0 : i32
    %c0_i32_1 = arith.constant 0 : i32
    %c0_i32_2 = arith.constant 0 : i32
    return %c0_i32, %c0_i32_0, %c0_i32_1 : i32, i32, i32
  }
  func.func @transform_6(%arg0: i32) -> (i32, i32, i32) {
    %c0_i32 = arith.constant 0 : i32
    %c0_i32_0 = arith.constant 0 : i32
    %c0_i32_1 = arith.constant 0 : i32
    %c0_i32_2 = arith.constant 0 : i32
    return %c0_i32, %c0_i32_0, %c0_i32_1 : i32, i32, i32
  }
  func.func @transform_7(%arg0: i32) -> (i32, i32) {
    %c0_i32 = arith.constant 0 : i32
    %c0_i32_0 = arith.constant 0 : i32
    %c0_i32_1 = arith.constant 0 : i32
    return %c0_i32, %c0_i32_0 : i32, i32
  }
  func.func @transform_8(%arg0: i32) -> (i32, i32) {
    %c0_i32 = arith.constant 0 : i32
    %c0_i32_0 = arith.constant 0 : i32
    %c0_i32_1 = arith.constant 0 : i32
    return %c0_i32, %c0_i32_0 : i32, i32
  }
  func.func @transform_9(%arg0: i32) -> (i32, i32) {
    %c0_i32 = arith.constant 0 : i32
    %c0_i32_0 = arith.constant 0 : i32
    %c0_i32_1 = arith.constant 0 : i32
    return %c0_i32, %c0_i32_0 : i32, i32
  }
  func.func @transform_10(%arg0: i32) -> (i32, i32) {
    %c0_i32 = arith.constant 0 : i32
    %c0_i32_0 = arith.constant 0 : i32
    %c0_i32_1 = arith.constant 0 : i32
    return %c0_i32, %c0_i32_0 : i32, i32
  }
  func.func @transform_11(%arg0: i32) -> (i32, i32) {
    %c0_i32 = arith.constant 0 : i32
    %c0_i32_0 = arith.constant 0 : i32
    %c0_i32_1 = arith.constant 0 : i32
    return %c0_i32, %c0_i32_0 : i32, i32
  }
  func.func @transform_12(%arg0: i32) -> (i32, i32, i32) {
    %c0_i32 = arith.constant 0 : i32
    %c0_i32_0 = arith.constant 0 : i32
    %c0_i32_1 = arith.constant 0 : i32
    %c0_i32_2 = arith.constant 0 : i32
    return %c0_i32, %c0_i32_0, %c0_i32_1 : i32, i32, i32
  }
  func.func @transform_13(%arg0: i32) -> (i32, i32, i32) {
    %c0_i32 = arith.constant 0 : i32
    %c0_i32_0 = arith.constant 0 : i32
    %c0_i32_1 = arith.constant 0 : i32
    %c0_i32_2 = arith.constant 0 : i32
    return %c0_i32, %c0_i32_0, %c0_i32_1 : i32, i32, i32
  }
  func.func @transform_14(%arg0: i32) -> (i32, i32) {
    %c0_i32 = arith.constant 0 : i32
    %c0_i32_0 = arith.constant 0 : i32
    %c0_i32_1 = arith.constant 0 : i32
    return %c0_i32, %c0_i32_0 : i32, i32
  }
  func.func @transform_15(%arg0: i32) -> (i32, i32) {
    %c0_i32 = arith.constant 0 : i32
    %c0_i32_0 = arith.constant 0 : i32
    %c0_i32_1 = arith.constant 0 : i32
    return %c0_i32, %c0_i32_0 : i32, i32
  }
  func.func @transform_16(%arg0: i32) -> (i32, i32, i32) {
    %c0_i32 = arith.constant 0 : i32
    %c0_i32_0 = arith.constant 0 : i32
    %c0_i32_1 = arith.constant 0 : i32
    %c0_i32_2 = arith.constant 0 : i32
    return %c0_i32, %c0_i32_0, %c0_i32_1 : i32, i32, i32
  }
  func.func @transform_17(%arg0: i32) -> (i32, i32, i32) {
    %c0_i32 = arith.constant 0 : i32
    %c0_i32_0 = arith.constant 0 : i32
    %c0_i32_1 = arith.constant 0 : i32
    %c0_i32_2 = arith.constant 0 : i32
    return %c0_i32, %c0_i32_0, %c0_i32_1 : i32, i32, i32
  }
  func.func @transform_18(%arg0: i32) -> (i32, i32) {
    %c0_i32 = arith.constant 0 : i32
    %c0_i32_0 = arith.constant 0 : i32
    return %arg0, %c0_i32 : i32, i32
  }
  func.func @transform_19(%arg0: i32) -> (i32, i32) {
    %c0_i32 = arith.constant 0 : i32
    %c0_i32_0 = arith.constant 0 : i32
    return %arg0, %c0_i32 : i32, i32
  }
}

</mosaic_0001>

<bundles_post_ra>
// kernel: conditional_vae_forward.1
= control target key start
LH: loop header
LB: loop body
LE: loop exit
PB: predicated region body
PF: predicated region fallthrough
CT: control target
= control target key end

     0   :  { %s2422_s0 = inlined_call_operand.vmem [shape: f32[16,22], index: 0, kind: input, shape index: {}]   ;;  %s2423_s1 = inlined_call_operand.vmem [shape: s32[16,1], index: 1, kind: input, shape index: {}]   ;;  %s2424_s2 = inlined_call_operand.vmem [shape: f32[16,8], index: 2, kind: input, shape index: {}]   ;;  %s2425_s3 = inlined_call_operand.vmem [shape: bf16[22,64], index: 3, kind: input, shape index: {}]   ;;  %s2426_s4 = inlined_call_operand.vmem [shape: f32[1,64], index: 4, kind: input, shape index: {}]   ;;  %s2427_s5 = inlined_call_operand.vmem [shape: bf16[3,32,32], index: 5, kind: input, shape index: {}]   ;;  %s2428_s6 = inlined_call_operand.vmem [shape: f32[3,1,32], index: 6, kind: input, shape index: {}]   ;;  %s2429_s7 = inlined_call_operand.vmem [shape: bf16[32,16], index: 7, kind: input, shape index: {}]   ;;  %s2430_s8 = inlined_call_operand.vmem [shape: f32[1,16], index: 8, kind: input, shape index: {}]   ;;  %s2431_s9 = inlined_call_operand.vmem [shape: f32[5,32], index: 9, kind: input, shape index: {}]   ;;  %s2432_s10 = inlined_call_operand.vmem [shape: bf16[8,32], index: 10, kind: input, shape index: {}]   ;;  %s2433_s11 = inlined_call_operand.vmem [shape: f32[1,32], index: 11, kind: input, shape index: {}]   ;;  %s2434_s12 = inlined_call_operand.vmem [shape: bf16[3,32,32], index: 12, kind: input, shape index: {}]   ;;  %s2435_s13 = inlined_call_operand.vmem [shape: f32[3,1,32], index: 13, kind: input, shape index: {}]   ;;  %s2436_s14 = inlined_call_operand.vmem [shape: bf16[32,16], index: 14, kind: input, shape index: {}]   ;;  %s2437_s15 = inlined_call_operand.vmem [shape: f32[1,16], index: 15, kind: input, shape index: {}]   ;;  %s2438_s16 = inlined_call_operand.vmem [shape: f32[4,1,32], index: 16, kind: input, shape index: {}]   ;;  %s2439_s17 = inlined_call_operand.vmem [shape: f32[4,1,32], index: 17, kind: input, shape index: {}]   ;;  %s2440_s18 = inlined_call_operand.hbm [shape: f32[16,16], index: 18, kind: output, shape index: {0}]   ;;  %s2441_s19 = inlined_call_operand.vmem [shape: f32[16,16], index: 19, kind: output, shape index: {1}]  }
   0x1   :  { %2447 = sst [smem:[#allocation8_spill]] %s2422_s0 }
   0x2   :  { %2448 = sst [smem:[#allocation9_spill]] %s2423_s1 }
   0x3   :  { %2449 = sst [smem:[#allocation10_spill]] %s2424_s2 }
   0x4   :  { %2450 = sst [smem:[#allocation11_spill]] %s2425_s3 }
   0x5   :  { %2451 = sst [smem:[#allocation12_spill]] %s2426_s4 }
   0x6   :  { %2452 = sst [smem:[#allocation13_spill]] %s2427_s5 }
   0x7   :  { %2453 = sst [smem:[#allocation14_spill]] %s2428_s6 }
   0x8   :  { %25 = vsyncpa [#allocation3], 0 }
   0x9   :  { %27 = vsyncpa [#allocation3 + $0x1], 0  ;;  %s2132_s0 = smov 0   ;;  %s2134_s30 = smov 0  }
   0xa   :  { %s2136_s20 = smov 0   ;;  %s2138_s21 = smov 0  }
   0xb LB: > { %2454 = sst [smem:[#allocation5_spill]] %s2020_s20  ;;  %s2153_s1 = sadd.s32 4294967295, %s2024_s21   ;;  %s2024_s21 = sphi %s2138_s21, %s2466_s21   ;;  %s2020_s20 = sphi %s2136_s20, %s2468_s20   ;;  %s2016_s30 = sphi %s2134_s30, %s2470_s30   ;;  %s2012_s0 = sphi %s2132_s0, %s2469_s0  }
   0xc   : > { %s1687_s22 = sadd.s32 4294967294, %s2024_s21   ;;  %s2157_s2 = sadd.s32 1, %s2024_s21  }
   0xd   : > { %2455 = sst [smem:[#allocation6_spill]] %s2157_s2  ;;  %s433_s23 = sadd.s32 1, %s2020_s20 }
   0xe   : > { %s430_s24 = ssub.s32 %s2024_s21, %s2157_s2  ;;  %p443_p0 = scmp.ne.s32.totalorder %s2020_s20, %s2016_s30 }
   0xf   : > { %p431_p1 = scmp.eq.s32.totalorder %s430_s24, 0  ;;  %p444_p2 = scmp.eq.s32.totalorder %s2153_s1, 1 }
  0x10   : > { %p449_p3 = scmp.ne.s32.totalorder %s2016_s30, %s2012_s0  ;;  %p450_p4 = scmp.eq.s32.totalorder %s1687_s22, 1 }
  0x11   : > { %s2168_s25 = scalar_select %p431_p1, %s2020_s20, %s433_s23  }
  0x12   : > { %p2170_p5 = por %p444_p2, %p443_p0  ;;  %p2174_p6 = por %p450_p4, %p449_p3 }
  0x13   : > { %2456 = sst [smem:[#allocation7_spill]] %s2168_s25  ;;  %p1690_p7 = scmp.ge.s32.totalorder %s2024_s21, 1 }
  0x14   : > { %p560_p8 = scmp.lt.s32.totalorder %s2024_s21, 3 }
  0x16   : > { %p561_p9 = pnand %p1690_p7, %p560_p8 }
  0x17   : > { %s2459_s29 = sld [smem:[#allocation11_spill]] (!%p561_p9)  ;;  %v2026_v1 = vmov (!%p561_p9), 0.0   ;;  %vm669_vm0 = vcmask (!%p561_p9), 1042432   ;;  %p627_p10 = scmp.lt.s32.totalorder (!%p561_p9), %s2153_s1, 1  ;;  %vm2027_vm1 = vmmov (!%p561_p9), 0   ;;  %vm665_vm2 = vcmask (!%p561_p9), 179200  }
  0x18   : > { %564 = sbr.rel (%p561_p9) target bundleno = 3635 (0xe33), region = 92  ;;  %1806 = vmatprep.subr.bf16.mxu0 (!%p561_p9), %v2026_v1  ;;  %1814 = vmatprep.subr.bf16.mxu1 (!%p561_p9), %v2026_v1  ;;  %s2460_s23 = sld [smem:[#allocation8_spill]] (!%p561_p9)  ;;  %vm738_vm3 = vcmask (!%p561_p9), 261120   ;;  %v1942_v38 = vld [vmem:[%s2429_s7] sm:$0xff] (!%p561_p9)   ;;  %v1943_v39 = vld [vmem:[%s2429_s7 + $0x8] sm:$0xff] (!%p561_p9)   ;;  %v2029_v49 = vmov (!%p561_p9), 0  }
  0x19   : > { %1810 = vmatprep.mubr.msk.bf16.mxu0 (!%p561_p9), %vm2027_vm1, %v2026_v1  ;;  %1818 = vmatprep.mubr.msk.bf16.mxu1 (!%p561_p9), %vm2027_vm1, %v2026_v1  ;;  %s2461_s5 = sld [smem:[#allocation13_spill]] (!%p561_p9)  ;;  %s2462_s4 = sld [smem:[#allocation12_spill]] (!%p561_p9)  ;;  %v1722_v50 = vld [vmem:[%s2430_s8] ss:$0 sm:$0xff] (!%p561_p9)  ;;  %vm993_vm4 = vcmask (!%p561_p9), 130048   ;;  %vm1018_vm5 = vcmask (!%p561_p9), 1043456  }
  0x1a   : > { %s2028_s20 = smov (!%p561_p9), 96   ;;  %s2463_s6 = sld [smem:[#allocation14_spill]] (!%p561_p9)  ;;  %1933 = vset.pattern.permute.xlu0 (!%p561_p9), %v2029_v49  ;;  %v1005_v58 = vld [vmem:[%s2432_s10] sm:$0xf] (!%p561_p9)  ;;  %vm1082_vm6 = vcmask (!%p561_p9), 1044480   ;;  %vm1014_vm7 = vcmask (!%p561_p9), 64512  }
  0x1b   : > { %v1020_v59 = vsel (!%p561_p9), %vm1018_vm5, %v1005_v58, 0  ;;  %v1077_v60 = vld [vmem:[%s2431_s9] sm:$0x1f] (!%p561_p9)  ;;  %vm1078_vm8 = vcmask (!%p561_p9), 39936   ;;  %s618_s25 = sand.u32 (!%p561_p9), 1, %s2016_s30  }
  0x1c   : > { %s1691_s22 = sshll.u32 (!%p561_p9), %s618_s25, 3 }
  0x1d   : > { %v1934_v0 = vld [vmem:[%s2459_s29] sm:$0xff] (!%p561_p9)   ;;  %v1935_v2 = vld [vmem:[%s2459_s29 + $0x8] ss:$0 sps:$4 sm:$0x77] (!%p561_p9)  }
  0x1e   : > { %1807 = vmatpush3.bf16.msra.mxu0 (!%p561_p9), %v1934_v0  ;;  %v671_v3 = vsel (!%p561_p9), %vm669_vm0, %v1935_v2, 0 }
  0x1f   : > { %1808 = vmatprep.subr.bf16.mxu0 %v2026_v1  ;;  %s628_s24 = scalar_select %p627_p10, %s2153_s1, 1  ;;  %v1936_v6 = vld [vmem:[%s2461_s5] sm:$0xff]   ;;  %v1937_v7 = vld [vmem:[%s2461_s5 + $0x8] sm:$0xff]   ;;  %v1938_v16 = vld [vmem:[%s2461_s5 + $0x10] sm:$0xff]  }
  0x20   : > { %1815 = vmatpush3.bf16.msra.mxu1 %v1936_v6  ;;  %v1696_v8 = vld [vmem:[%s2462_s4] ss:$0 sm:$0xff]  ;;  %v1939_v17 = vld [vmem:[%s2461_s5 + $0x18] sm:$0xff]   ;;  %v1941_v28 = vld [vmem:[%s2461_s5 + $0x28] sm:$0xff]  }
  0x21   : > { %s2195_s27 = sshll.u32 %s628_s24, 3  ;;  %1816 = vmatprep.subr.bf16.mxu1 %v2026_v1  ;;  %v1700_v18 = vld [vmem:[%s2463_s6] ss:$0 sm:$0xff]  ;;  %v1709_v29 = vld [vmem:[%s2463_s6 + $0x1] ss:$0 sm:$0xff] }
  0x22   : > { %1809 = vmatpush3.bf16.msra.mxu0 %v671_v3  ;;  %s630_s29 = scalar_lea.vmem %s2460_s23, %s2195_s27  ;;  %v1940_v27 = vld [vmem:[%s2461_s5 + $0x20] sm:$0xff]   ;;  %s642_s28 = scalar_lea.vmem %s2441_s19, %s2195_s27 }
  0x23   : > { %1822 = vmatprep.subr.bf16.mxu0 %v2026_v1  ;;  %v644_v4 = vld [vmem:[%s630_s29] sm:$0xff]  ;;  %s2464_s29 = sld [smem:[#allocation9_spill]]  ;;  %s2465_s5 = sld [smem:[#allocation10_spill]] }
  0x24   : > { %v648_v5 = vpack.c.bf16 %v644_v4, %v644_v4  ;;  %1817 = vmatpush3.bf16.msra.mxu1 %v1937_v7  ;;  %v1718_v40 = vld [vmem:[%s2463_s6 + $0x2] ss:$0 sm:$0xff] }
  0x25   : > { %1830 = vmatprep.subr.bf16.mxu1 %v2026_v1 }
  0x26   : > { %1811 = vmatmul.mubr.msk.bf16.vlgmr.msra.gmra.mrb[0].mxu0 %vm665_vm2, %v648_v5  ;;  %v1069_v5 = vlaneseq }
  0x27   : > { %1826 = vmatprep.mubr.msk.bf16.mxu0 %vm2027_vm1, %v2026_v1  ;;  %1823 = vmatpush3.bf16.msra.mxu0 %v1938_v16 }
  0x28   : > { %1824 = vmatprep.subr.bf16.mxu0 %v2026_v1  ;;  %v1070_v6 = vand.u32 127, %v1069_v5  ;;  %v1747_v5 = vld [vmem:[%s2438_s16 + $0x1] ss:$0 sm:$0xff] }
  0x29   : > { %s638_s6 = scalar_lea.vmem %s2465_s5, %s2195_s27 }
  0x2a   : > { %v995_v63 = vld [vmem:[%s638_s6] sm:$0xff] }
  0x2b   : > { %1825 = vmatpush3.bf16.msra.mxu0 %v1939_v17 }
  0x2c   : > { %1838 = vmatprep.subr.bf16.mxu0 %v2026_v1 }
  0xf9   : > { %v707_v9 = vpop.f32.mrb[0].mxu0 }
  0xfa   : > { %v708_v10 = vadd.f32 %v1696_v8, %v707_v9  ;;  %v1812_v11 = vpop.f32.mrb[1].mxu0  ;;  %v1944_v9 = vld [vmem:[%s2434_s12] sm:$0xff]  }
  0xfb   : > { %v710_v12 = vpop.f32.mrb[2].mxu0 }
  0xfc   : > { %v713_v13 = vmax.f32 %v708_v10, 0.0  ;;  %v1813_v14 = vpop.f32.mrb[3].mxu0  ;;  %v1945_v10 = vld [vmem:[%s2434_s12 + $0x8] sm:$0xff]   ;;  %v1726_v12 = vld [vmem:[%s2433_s11] ss:$0 sm:$0xff] }
  0xfe   : > { %v718_v15 = vpack.c.bf16 %v713_v13, %v713_v13  ;;  %1064 = vrot.lane.b32.xlu1 %v713_v13, %s2028_s20  ;;  %s2030_s20 = smov 120  }
 0x100   : > { %1819 = vmatmul.mubr.msk.bf16.vlgmr.msra.gmra.mrb[0].mxu1 %vm738_vm3, %v718_v15 }
 0x101   : > { %1834 = vmatprep.mubr.msk.bf16.mxu1 %vm2027_vm1, %v2026_v1  ;;  %1831 = vmatpush3.bf16.msra.mxu1 %v1940_v27 }
 0x102   : > { %1832 = vmatprep.subr.bf16.mxu1 %v2026_v1 }
 0x105   : > { %1833 = vmatpush3.bf16.msra.mxu1 %v1941_v28 }
 0x106   : > { %1846 = vmatprep.subr.bf16.mxu1 %v2026_v1 }
 0x1d3   : > { %v776_v19 = vpop.f32.mrb[0].mxu1 }
 0x1d4   : > { %v777_v20 = vadd.f32 %v1700_v18, %v776_v19  ;;  %v1820_v21 = vpop.f32.mrb[1].mxu1  ;;  %v1065_v18 = vpop.permute.xlu1 %1064 }
 0x1d5   : > { %v779_v22 = vpop.f32.mrb[2].mxu1 }
 0x1d6   : > { %v782_v23 = vmax.f32 %v777_v20, 0.0  ;;  %v1821_v24 = vpop.f32.mrb[3].mxu1 }
 0x1d7   : > { %v1731_v24 = vld [vmem:[%s2435_s13] ss:$0 sm:$0xff] }
 0x1d8   : > { %v783_v25 = vadd.f32 %v782_v23, %v713_v13 }
 0x1da   : > { %v789_v26 = vpack.c.bf16 %v783_v25, %v783_v25 }
 0x1dc   : > { %1827 = vmatmul.mubr.msk.bf16.vlgmr.msra.gmra.mrb[4].mxu0 %vm738_vm3, %v789_v26 }
 0x1dd   : > { %1842 = vmatprep.mubr.msk.bf16.mxu0 %vm2027_vm1, %v2026_v1  ;;  %1839 = vmatpush3.bf16.msra.mxu0 %v1942_v38 }
 0x1de   : > { %1840 = vmatprep.subr.bf16.mxu0 %v2026_v1 }
 0x1e1   : > { %1841 = vmatpush3.bf16.msra.mxu0 %v1943_v39 }
 0x1e2   : > { %1852 = vmatprep.subr.mxu0 %v2026_v1 }
 0x2af   : > { %v847_v30 = vpop.f32.mrb[4].mxu0 }
 0x2b0   : > { %v848_v31 = vadd.f32 %v1709_v29, %v847_v30  ;;  %v1828_v32 = vpop.f32.mrb[5].mxu0 }
 0x2b1   : > { %v850_v33 = vpop.f32.mrb[6].mxu0 }
 0x2b2   : > { %v853_v34 = vmax.f32 %v848_v31, 0.0  ;;  %v1829_v35 = vpop.f32.mrb[7].mxu0 }
 0x2b4   : > { %v854_v36 = vadd.f32 %v853_v34, %v783_v25 }
 0x2b6   : > { %v860_v37 = vpack.c.bf16 %v854_v36, %v854_v36 }
 0x2b8   : > { %1835 = vmatmul.mubr.msk.bf16.vlgmr.msra.gmra.mrb[4].mxu1 %vm738_vm3, %v860_v37  ;;  %v1947_v37 = vld [vmem:[%s2434_s12 + $0x18] sm:$0xff]  }
 0x2b9   : > { %1848 = vmatprep.mubr.msk.bf16.mxu1 %vm2027_vm1, %v2026_v1  ;;  %1847 = vmatpush3.bf16.msra.mxu1 %v1020_v59 }
 0x2ba   : > { %1857 = vmatprep.subr.bf16.mxu1 %v2026_v1 }
 0x38b   : > { %v918_v41 = vpop.f32.mrb[4].mxu1 }
 0x38c   : > { %v919_v42 = vadd.f32 %v1718_v40, %v918_v41  ;;  %v1836_v43 = vpop.f32.mrb[5].mxu1 }
 0x38d   : > { %v921_v44 = vpop.f32.mrb[6].mxu1 }
 0x38e   : > { %v924_v45 = vmax.f32 %v919_v42, 0.0  ;;  %v1837_v46 = vpop.f32.mrb[7].mxu1  ;;  %v1735_v42 = vld [vmem:[%s2438_s16] ss:$0 sm:$0xff] }
 0x38f   : > { %v1736_v44 = vld [vmem:[%s2439_s17] ss:$0 sm:$0xff] }
 0x390   : > { %v925_v47 = vadd.f32 %v924_v45, %v854_v36  ;;  %v1946_v36 = vld [vmem:[%s2434_s12 + $0x10] sm:$0xff]  }
 0x392   : > { %v930_v48 = vpack.c.bf16 %v925_v47, %v925_v47 }
 0x394   : > { %1843 = vmatmul.mubr.msk.bf16.vlgmr.msra.gmra.mrb[8].mxu0 %vm738_vm3, %v930_v48 }
 0x395   : > { %1854 = vmatprep.mubr.msk.f32.mxu0 %vm2027_vm1, %v2026_v1  ;;  %1853 = vmatpush3.msk.msra.mxu0 %vm1082_vm6, %v1077_v60 }
 0x396   : > { %1865 = vmatprep.subr.bf16.mxu0 %v2026_v1 }
 0x467   : > { %v987_v51 = vpop.f32.mrb[8].mxu0 }
 0x468   : > { %v988_v52 = vadd.f32 %v1722_v50, %v987_v51  ;;  %v1844_v53 = vpop.f32.mrb[9].mxu0  ;;  %v1742_v50 = vld [vmem:[%s2435_s13 + $0x1] ss:$0 sm:$0xff] }
 0x469   : > { %v990_v54 = vpop.f32.mrb[10].mxu0 }
 0x46a   : > { %994 = vst.msk [vmem:[%s642_s28] sm:$0xff] %vm993_vm4, %v988_v52  ;;  %v996_v55 = vmul.f32 0.5, %v988_v52  ;;  %v1845_v56 = vpop.f32.mrb[11].mxu0  ;;  %s634_s28 = scalar_lea.vmem %s2464_s29, %s2195_s27  ;;  %s1772_s29 = sshll.u32 %s2153_s1, 7 }
 0x46b   : > { %v1068_v62 = vld [vmem:[%s634_s28] sm:$0xff]  ;;  %s620_s28 = scalar_lea.vmem [#allocation2], %s1691_s22  ;;  %s2379_s5 = scalar_lea.hbm %s2440_s18, %s1772_s29 }
 0x46c   : > { %v997_v57 = vmul.f32 1.442695, %v996_v55  ;;  %s1560_s1 = scalar_lea.sflag [#allocation3], %s618_s25  ;;  %s2031_s27 = smov [#allocation2]  }
 0x46d   : > { %s1966_s22 = sshll.u32 %s2031_s27, 4  ;;  %s1967_s22 = int_to_ptr.vmem [resolvable:$false] %s1966_s22 }
 0x46e   : > { %1952 = vpow2.f32 %v997_v57  ;;  %s1968_s23 = scalar_lea.vmem %s1967_s22, 256 }
 0x478   : > { %v1953_v61 = vpop.eup %1952 }
 0x479   : > { %1000 = vrot.lane.b32.xlu0 %v1953_v61, %s2030_s20  ;;  %s1577_s20 = sshll.u32 %s620_s28, 4  ;;  %s2381_s20 = int_to_ptr.vmem [resolvable:$true] %s1577_s20 }
 0x47a   : > { %s1962_s6 = scalar_lea.vmem %s2381_s20, 128  ;;  %p1969_p0 = scmp.lt.s32.totalorder %s2381_s20, %s1967_s22 }
 0x47b   : > { %p1963_p11 = scmp.ne.s32.totalorder %s2381_s20, %s1962_s6  ;;  %p1970_p1 = scmp.lt.s32.totalorder %s1968_s23, %s1962_s6 }
 0x47d   : > { %1072 = vperm.xlu0 %1933, %v1068_v62   ;;  %v1948_v62 = vld [vmem:[%s2434_s12 + $0x20] sm:$0xff]   ;;  %p1964_p12 = pnand %p1963_p11, %p2170_p5  ;;  %p1971_p2 = por %p1970_p1, %p1969_p0 }
 0x47f   : > { %p1965_p13 = pneg %p1964_p12 }
 0x481   : > { %p1972_p3 = pnand %p1971_p2, %p1965_p13 }
 0x4eb   : > { %v1001_v0 = vpop.permute.xlu0 %1000 }
 0x4ec   : > { %v1003_v2 = vmul.f32 %v1001_v0, %v995_v63  ;;  %v1949_v63 = vld [vmem:[%s2434_s12 + $0x28] sm:$0xff]  }
 0x4ee   : > { %v1004_v3 = vadd.f32 %v1003_v2, %v988_v52 }
 0x4f0   : > { %v1006_v4 = vpack.c.bf16 %v1004_v3, %v1004_v3 }
 0x4f2   : > { %1849 = vmatmul.mubr.msk.bf16.vlgmr.msra.gmra.mrb[8].mxu1 %vm1014_vm7, %v1006_v4 }
 0x4f3   : > { %1861 = vmatprep.mubr.msk.bf16.mxu1 %vm2027_vm1, %v2026_v1  ;;  %1858 = vmatpush3.bf16.msra.mxu1 %v1944_v9 }
 0x4f4   : > { %1859 = vmatprep.subr.bf16.mxu1 %v2026_v1 }
 0x4f7   : > { %1860 = vmatpush3.bf16.msra.mxu1 %v1945_v10 }
 0x4f8   : > { %1873 = vmatprep.subr.bf16.mxu1 %v2026_v1 }
 0x4fc   : > { %v1073_v7 = vpop.permute.xlu0 %1072 }
 0x4fd   : > { %vm1074_vm9 = vcmp.eq.s32.totalorder %v1070_v6, %v1073_v7  ;;  %v1749_v7 = vld [vmem:[%s2439_s17 + $0x1] ss:$0 sm:$0xff] }
 0x4fe   : > { %v1728_v8 = vsel %vm1074_vm9, 1.0, %v2026_v1 }
 0x4ff   : > { %1855 = vmatmul.mubr.msk.f32.vlgmr.msra.gmra.mrb[12].mxu0 %vm1078_vm8, %v1728_v8 }
 0x500   : > { %1869 = vmatprep.mubr.msk.bf16.mxu0 %vm2027_vm1, %v2026_v1  ;;  %1866 = vmatpush3.bf16.msra.mxu0 %v1946_v36 }
 0x501   : > { %1867 = vmatprep.subr.bf16.mxu0 %v2026_v1 }
 0x504   : > { %1868 = vmatpush3.bf16.msra.mxu0 %v1947_v37 }
 0x505   : > { %1881 = vmatprep.subr.bf16.mxu0 %v2026_v1 }
 0x5c5   : > { %v1056_v11 = vpop.f32.mrb[8].mxu1 }
 0x5c6   : > { %v1850_v13 = vpop.f32.mrb[9].mxu1  ;;  %v1057_v16 = vadd.f32 %v1726_v12, %v1056_v11 }
 0x5c7   : > { %v1059_v14 = vpop.f32.mrb[10].mxu1  ;;  %v1755_v13 = vld [vmem:[%s2435_s13 + $0x2] ss:$0 sm:$0xff] }
 0x5c8   : > { %v1851_v15 = vpop.f32.mrb[11].mxu1  ;;  %v1062_v17 = vmax.f32 %v1057_v16, 0.0 }
 0x5ca   : > { %v1067_v19 = vadd.f32 %v1065_v18, %v1062_v17 }
 0x5d2   : > { %v1152_v20 = vpop.f32.mrb[12].mxu0 }
 0x5d3   : > { %v1156_v21 = vadd.f32 %v1152_v20, %v1067_v19  ;;  %v1856_v22 = vpop.f32.mrb[13].mxu0 }
 0x5d5   : > { %v1161_v23 = vpack.c.bf16 %v1156_v21, %v1156_v21 }
 0x5d7   : > { %1862 = vmatmul.mubr.msk.bf16.vlgmr.msra.gmra.mrb[12].mxu1 %vm738_vm3, %v1161_v23 }
 0x5d8   : > { %1877 = vmatprep.mubr.msk.bf16.mxu1 %vm2027_vm1, %v2026_v1  ;;  %1874 = vmatpush3.bf16.msra.mxu1 %v1948_v62 }
 0x5d9   : > { %1875 = vmatprep.subr.bf16.mxu1 %v2026_v1 }
 0x5dc   : > { %1876 = vmatpush3.bf16.msra.mxu1 %v1949_v63 }
 0x6aa   : > { %v1218_v25 = vpop.f32.mrb[12].mxu1 }
 0x6ab   : > { %v1219_v26 = vadd.f32 %v1731_v24, %v1218_v25  ;;  %v1863_v27 = vpop.f32.mrb[13].mxu1 }
 0x6ac   : > { %v1221_v28 = vpop.f32.mrb[14].mxu1 }
 0x6ad   : > { %v1864_v29 = vpop.f32.mrb[15].mxu1  ;;  %v1224_v30 = vsel %vm738_vm3, %v1219_v26, 0.0 }
 0x6ae   : > { %1225 = vadd.xlane.f32.xlu1 %v1224_v30  ;;  %v1760_v29 = vld [vmem:[%s2438_s16 + $0x2] ss:$0 sm:$0xff] }
 0x73b   : > { %v1226_v31 = vpop.xlane.xlu1 %1225 }
 0x73c   : > { %v1228_v32 = vmul.f32 0.03125, %v1226_v31  ;;  %v1762_v31 = vld [vmem:[%s2439_s17 + $0x2] ss:$0 sm:$0xff] }
 0x73e   : > { %v1229_v33 = vsub.f32 %v1219_v26, %v1228_v32 }
 0x740   : > { %v1230_v34 = vmul.f32 %v1229_v33, %v1229_v33 }
 0x742   : > { %v1231_v35 = vsel %vm738_vm3, %v1230_v34, 0.0 }
 0x743   : > { %1232 = vadd.xlane.f32.xlu0 %v1231_v35 }
 0x7d0   : > { %v1233_v38 = vpop.xlane.xlu0 %1232 }
 0x7d1   : > { %v1234_v39 = vmul.f32 0.03125, %v1233_v38 }
 0x7d3   : > { %v1235_v40 = vadd.f32 1e-05, %v1234_v39 }
 0x7d5   : > { %1954 = vrsqrt.f32 %v1235_v40 }
 0x7df   : > { %v1955_v41 = vpop.eup %1954 }
 0x7e0   : > { %v1237_v43 = vmul.f32 %v1955_v41, %v1229_v33 }
 0x7e2   : > { %v1245_v45 = vmul.f32 %v1735_v42, %v1237_v43  ;;  %v1950_v42 = vld [vmem:[%s2436_s14] sm:$0xff]   ;;  %v1951_v43 = vld [vmem:[%s2436_s14 + $0x8] sm:$0xff]  }
 0x7e4   : > { %v1253_v46 = vadd.f32 %v1736_v44, %v1245_v45 }
 0x7e6   : > { %v1254_v47 = vmax.f32 %v1253_v46, 0.0 }
 0x7e8   : > { %v1255_v48 = vadd.f32 %v1254_v47, %v1156_v21 }
 0x7ea   : > { %v1261_v49 = vpack.c.bf16 %v1255_v48, %v1255_v48 }
 0x7ec   : > { %1870 = vmatmul.mubr.msk.bf16.vlgmr.msra.gmra.mrb[16].mxu0 %vm738_vm3, %v1261_v49 }
 0x7ed   : > { %1885 = vmatprep.mubr.msk.bf16.mxu0 %vm2027_vm1, %v2026_v1  ;;  %1882 = vmatpush3.bf16.msra.mxu0 %v1950_v42 }
 0x7ee   : > { %1883 = vmatprep.subr.bf16.mxu0 %v2026_v1  ;;  %v1766_v1 = vld [vmem:[%s2439_s17 + $0x3] ss:$0 sm:$0xff] }
 0x7f1   : > { %1884 = vmatpush3.bf16.msra.mxu0 %v1951_v43 }
 0x8bf   : > { %v1319_v51 = vpop.f32.mrb[16].mxu0 }
 0x8c0   : > { %v1320_v52 = vadd.f32 %v1742_v50, %v1319_v51  ;;  %v1871_v53 = vpop.f32.mrb[17].mxu0 }
 0x8c1   : > { %v1322_v54 = vpop.f32.mrb[18].mxu0  ;;  %v1767_v53 = vld [vmem:[%s2437_s15] ss:$0 sm:$0xff] }
 0x8c2   : > { %v1872_v55 = vpop.f32.mrb[19].mxu0  ;;  %v1325_v56 = vsel %vm738_vm3, %v1320_v52, 0.0 }
 0x8c3   : > { %1326 = vadd.xlane.f32.xlu1 %v1325_v56 }
 0x950   : > { %v1327_v57 = vpop.xlane.xlu1 %1326 }
 0x951   : > { %v1328_v58 = vmul.f32 0.03125, %v1327_v57 }
 0x953   : > { %v1329_v59 = vsub.f32 %v1320_v52, %v1328_v58 }
 0x955   : > { %v1330_v60 = vmul.f32 %v1329_v59, %v1329_v59 }
 0x957   : > { %v1331_v61 = vsel %vm738_vm3, %v1330_v60, 0.0 }
 0x958   : > { %1332 = vadd.xlane.f32.xlu0 %v1331_v61 }
 0x9e5   : > { %v1333_v0 = vpop.xlane.xlu0 %1332 }
 0x9e6   : > { %v1334_v2 = vmul.f32 0.03125, %v1333_v0 }
 0x9e8   : > { %v1335_v3 = vadd.f32 1e-05, %v1334_v2 }
 0x9ea   : > { %1956 = vrsqrt.f32 %v1335_v3 }
 0x9f4   : > { %v1957_v4 = vpop.eup %1956 }
 0x9f5   : > { %v1337_v6 = vmul.f32 %v1957_v4, %v1329_v59 }
 0x9f7   : > { %v1346_v8 = vmul.f32 %v1747_v5, %v1337_v6 }
 0x9f9   : > { %v1355_v9 = vadd.f32 %v1749_v7, %v1346_v8 }
 0x9fb   : > { %v1356_v10 = vmax.f32 %v1355_v9, 0.0 }
 0x9fd   : > { %v1357_v11 = vadd.f32 %v1356_v10, %v1255_v48  ;;  %v1764_v48 = vld [vmem:[%s2438_s16 + $0x3] ss:$0 sm:$0xff] }
 0x9ff   : > { %v1363_v12 = vpack.c.bf16 %v1357_v11, %v1357_v11 }
 0xa01   : > { %1878 = vmatmul.mubr.msk.bf16.vlgmr.msra.gmra.mrb[16].mxu1 %vm738_vm3, %v1363_v12 }
 0xad4   : > { %v1421_v14 = vpop.f32.mrb[16].mxu1 }
 0xad5   : > { %v1422_v15 = vadd.f32 %v1755_v13, %v1421_v14  ;;  %v1879_v16 = vpop.f32.mrb[17].mxu1 }
 0xad6   : > { %v1424_v17 = vpop.f32.mrb[18].mxu1 }
 0xad7   : > { %v1880_v18 = vpop.f32.mrb[19].mxu1  ;;  %v1427_v19 = vsel %vm738_vm3, %v1422_v15, 0.0 }
 0xad8   : > { %1428 = vadd.xlane.f32.xlu1 %v1427_v19 }
 0xb65   : > { %v1429_v20 = vpop.xlane.xlu1 %1428 }
 0xb66   : > { %v1430_v21 = vmul.f32 0.03125, %v1429_v20 }
 0xb68   : > { %v1431_v22 = vsub.f32 %v1422_v15, %v1430_v21 }
 0xb6a   : > { %v1432_v23 = vmul.f32 %v1431_v22, %v1431_v22 }
 0xb6c   : > { %v1433_v24 = vsel %vm738_vm3, %v1432_v23, 0.0 }
 0xb6d   : > { %1434 = vadd.xlane.f32.xlu0 %v1433_v24 }
 0xbfa   : > { %v1435_v25 = vpop.xlane.xlu0 %1434 }
 0xbfb   : > { %v1436_v26 = vmul.f32 0.03125, %v1435_v25 }
 0xbfd   : > { %v1437_v27 = vadd.f32 1e-05, %v1436_v26 }
 0xbff   : > { %1958 = vrsqrt.f32 %v1437_v27 }
 0xc09   : > { %v1959_v28 = vpop.eup %1958 }
 0xc0a   : > { %v1439_v30 = vmul.f32 %v1959_v28, %v1431_v22 }
 0xc0c   : > { %v1448_v32 = vmul.f32 %v1760_v29, %v1439_v30 }
 0xc0e   : > { %v1457_v33 = vadd.f32 %v1762_v31, %v1448_v32 }
 0xc10   : > { %v1458_v34 = vmax.f32 %v1457_v33, 0.0 }
 0xc12   : > { %v1459_v35 = vadd.f32 %v1458_v34, %v1357_v11 }
 0xc14   : > { %v1460_v36 = vsel %vm738_vm3, %v1459_v35, 0.0 }
 0xc15   : > { %1461 = vadd.xlane.f32.xlu1 %v1460_v36 }
 0xca2   : > { %v1462_v37 = vpop.xlane.xlu1 %1461 }
 0xca3   : > { %v1463_v38 = vmul.f32 0.03125, %v1462_v37 }
 0xca5   : > { %v1464_v39 = vsub.f32 %v1459_v35, %v1463_v38 }
 0xca7   : > { %v1465_v40 = vmul.f32 %v1464_v39, %v1464_v39 }
 0xca9   : > { %v1466_v41 = vsel %vm738_vm3, %v1465_v40, 0.0 }
 0xcaa   : > { %1467 = vadd.xlane.f32.xlu0 %v1466_v41 }
 0xd37   : > { %v1468_v44 = vpop.xlane.xlu0 %1467 }
 0xd38   : > { %v1469_v45 = vmul.f32 0.03125, %v1468_v44 }
 0xd3a   : > { %v1470_v46 = vadd.f32 1e-05, %v1469_v45 }
 0xd3c   : > { %1960 = vrsqrt.f32 %v1470_v46 }
 0xd46   : > { %v1961_v47 = vpop.eup %1960 }
 0xd47   : > { %v1472_v49 = vmul.f32 %v1961_v47, %v1464_v39 }
 0xd49   : > { %v1481_v50 = vmul.f32 %v1764_v48, %v1472_v49 }
 0xd4b   : > { %v1490_v51 = vadd.f32 %v1766_v1, %v1481_v50 }
 0xd4d   : > { %v1495_v52 = vpack.c.bf16 %v1490_v51, %v1490_v51 }
 0xd4f   : > { %1886 = vmatmul.mubr.msk.bf16.vlgmr.msra.gmra.mrb[20].mxu0 %vm738_vm3, %v1495_v52 }
 0xe22   : > { %v1552_v54 = vpop.f32.mrb[20].mxu0 }
 0xe23   : > { %v1553_v55 = vadd.f32 %v1767_v53, %v1552_v54  ;;  %v1887_v56 = vpop.f32.mrb[21].mxu0 }
 0xe24   : > { %v1555_v57 = vpop.f32.mrb[22].mxu0 }
 0xe25   : > { %v1888_v58 = vpop.f32.mrb[23].mxu0  ;;  %1558 = vst.msk [vmem:[%s620_s28] sm:$0xff] %vm993_vm4, %v1553_v55 }
 0xe26   : > { %1975 = shalt.err (!%p1972_p3)
}
 0xe27   : > { %s1976_s25 = scalar_lea.hbm %s2379_s5, 128  ;;  %s1980_s28 = scalar_lea.hbm %s2440_s18, 256 }
 0xe28   : > { %p1977_p4 = scmp.ne.s32.totalorder %s2379_s5, %s1976_s25  ;;  %p1981_p9 = scmp.lt.u32.totalorder %s2379_s5, %s2440_s18 }
 0xe29   : > { %p1982_p10 = scmp.lt.u32.totalorder %s1980_s28, %s1976_s25  ;;  %p1984_p12 = scmp.lt.u32.totalorder %s1976_s25, %s2379_s5 }
 0xe2a   : > { %p1978_p7 = pnand %p1977_p4, %p2170_p5 }
 0xe2b   : > { %p1983_p11 = por %p1982_p10, %p1981_p9 }
 0xe2c   : > { %p1979_p8 = pneg %p1978_p7 }
 0xe2d   : > { %p1985_p13 = por %p1984_p12, %p1983_p11 }
 0xe2f   : > { %p1986_p0 = pnand %p1985_p13, %p1979_p8 }
 0xe31   : > { %1989 = shalt.err (!%p1986_p0)
}
 0xe32   : > { %1889 = dma.vmem_to_hbm [thread:$0]  (%p2170_p5), %s2381_s20, 128, %s2379_s5, %s1560_s1  }
 0xe33 PF: > { %p1895_p1 = scmp.ge.s32.totalorder %s2024_s21, 2  ;;  %s1592_s6 = sand.u32 1, %s2012_s0  }
 0xe34   : > { %s1593_s27 = scalar_lea.sflag [#allocation3], %s1592_s6 }
 0xe35   : > { %p1892_p2 = pnand %p1895_p1, %p2174_p6 }
 0xe37   : > { %2007 = dma.done.wait (!%p1892_p2), %s1593_s27, 128  }
 0xe38   : > { %2009 = vsyncadd (!%p1892_p2), %s1593_s27, 4294967168  ;;  %s2466_s21 = sld [smem:[#allocation6_spill]]  ;;  %s2467_s22 = sld [smem:[#allocation5_spill]] }
 0xe39   : > { %s2468_s20 = sld [smem:[#allocation7_spill]]  ;;  %s2469_s0 = smov %s2016_s30 }
 0xe3e   : > { %p30_p3 = scmp.ge.s32.totalorder %s2466_s21, 4   ;;  %s2470_s30 = smov %s2467_s22 }
 0xe40   :  { %32 = sbr.rel (!%p30_p3) target bundleno = 11 (0xb), region = 159 }
 0xe47   :  { %1605 = vsyncpa [#allocation3], 1 }
 0xe48   :  { %1607 = vsyncpa [#allocation3 + $0x1], 1 }

</bundles_post_ra>
